<compile_context>
chip_gen: v6e
topology: v6e:2x2x1
jax: 0.10.0
libtpu: 0.0.40
codegen_flags: <defaults>
</compile_context>

<pallas_src>
import math

import jax
import jax.numpy as jnp
from jax.experimental import pallas as pl
from jax.experimental.pallas import tpu as pltpu


def _round_up(x, m):
    return (x + m - 1) // m * m


def lstmp_kernel(xh_ref, c_ref, w_gates_ref, bias_ref, wrec_ref,
                 h_out_ref, c_out_ref):
    """One batch tile of the LSTMP cell.

    xh_ref      : (TB, Kp)    compute dtype   [x ++ h] along features
    c_ref       : (TB, Hp)    f32             cell state
    w_gates_ref : (Kp, 4*Hp)  compute dtype   [W_ih^T ; W_hh^T], gate-wise padded
    bias_ref    : (1, 4*Hp)   f32
    wrec_ref    : (Hp, Rp)    compute dtype   W_rec^T
    h_out_ref   : (TB, Rp)    f32
    c_out_ref   : (TB, Hp)    f32
    """
    Hp = c_ref.shape[1]

    # Single fused MXU matmul (bf16/f32 operands, f32 accumulation) + bias.
    pre = jnp.dot(xh_ref[...], w_gates_ref[...],
                  preferred_element_type=jnp.float32) + bias_ref[...]

    # Gate math in f32; slices are lane-aligned because Hp % 128 == 0.
    i = jax.nn.sigmoid(pre[:, 0 * Hp:1 * Hp])
    f = jax.nn.sigmoid(pre[:, 1 * Hp:2 * Hp])
    g = jnp.tanh(pre[:, 2 * Hp:3 * Hp])
    o = jax.nn.sigmoid(pre[:, 3 * Hp:4 * Hp])

    c_new = f * c_ref[...] + i * g
    h_act = o * jnp.tanh(c_new)

    # Recurrent projection on the MXU (f32 accumulation).
    h_proj = jnp.dot(h_act.astype(wrec_ref.dtype), wrec_ref[...],
                     preferred_element_type=jnp.float32)

    h_out_ref[...] = h_proj.astype(h_out_ref.dtype)
    c_out_ref[...] = c_new.astype(c_out_ref.dtype)


def prepare_lstmp_params(weight_ih, weight_hh, weight_rec, bias,
                         compute_dtype=jnp.bfloat16):
    """One-time weight preparation (hoist OUTSIDE any per-timestep loop).

    Transposes, fuses the two gate matrices along K, lane-pads every gate and
    the projection to multiples of 128, and casts the matmul operands to
    `compute_dtype`.  Zero-padding is exact: padded gate columns produce
    c' = 0 and contribute nothing to the projection output.
    """
    H4, input_size = weight_ih.shape
    H = H4 // 4
    R = weight_rec.shape[0]
    assert weight_hh.shape == (H4, R)
    assert weight_rec.shape == (R, H)
    if bias is None:
        bias = jnp.zeros((H4,), jnp.float32)

    Hp = _round_up(H, 128)
    Rp = _round_up(R, 128)
    Kp = _round_up(input_size + R, 128)

    def pad_gates(w_t):  # (K, 4H) -> (K, 4*Hp), padded per gate
        K = w_t.shape[0]
        w = w_t.reshape(K, 4, H)
        w = jnp.pad(w, ((0, 0), (0, 0), (0, Hp - H)))
        return w.reshape(K, 4 * Hp)

    wih_t = pad_gates(weight_ih.T)                      # (In, 4Hp)
    whh_t = pad_gates(weight_hh.T)                      # (R,  4Hp)
    w_gates = jnp.concatenate([wih_t, whh_t], axis=0)   # (In+R, 4Hp)
    w_gates = jnp.pad(w_gates, ((0, Kp - (input_size + R)), (0, 0)))

    b = jnp.pad(bias.reshape(4, H), ((0, 0), (0, Hp - H))).reshape(1, 4 * Hp)
    wrec_t = jnp.pad(weight_rec.T, ((0, Hp - H), (0, Rp - R)))   # (Hp, Rp)

    return dict(
        w_gates=w_gates.astype(compute_dtype),
        bias=b.astype(jnp.float32),
        wrec_t=wrec_t.astype(compute_dtype),
        input_size=input_size, hidden_size=H, recurrent_size=R,
        Hp=Hp, Rp=Rp, Kp=Kp, compute_dtype=compute_dtype,
    )


def lstmp_cell_prepared(x, h, c, params):
    """Pallas-backed LSTMPCell forward using pre-prepared weights."""
    B = x.shape[0]
    In = params["input_size"]
    H = params["hidden_size"]
    R = params["recurrent_size"]
    Hp, Rp, Kp = params["Hp"], params["Rp"], params["Kp"]
    cdt = params["compute_dtype"]
    out_dtype = x.dtype

    # Batch tiling: pad B to a multiple of 8 and pick a tile TB that divides Bp.
    Bp = _round_up(B, 8)
    TB = min(Bp, 256)
    Bp = _round_up(Bp, TB)

    # Activations: fuse [x ++ h] along features so the kernel does ONE gate
    # matmul; zero-pad and cast once per step (cheap relative to weights).
    xh = jnp.concatenate([x, h], axis=1)
    xh = jnp.pad(xh, ((0, Bp - B), (0, Kp - (In + R)))).astype(cdt)
    c_p = jnp.pad(c, ((0, Bp - B), (0, Hp - H))).astype(jnp.float32)

    grid = (Bp // TB,)

    def act_spec(cols):
        return pl.BlockSpec((TB, cols), lambda b: (b, 0))

    def pinned(shape):  # weights: same block for every grid step -> VMEM-resident
        return pl.BlockSpec(shape, lambda b: (0, 0))

    itemsz = jnp.dtype(cdt).itemsize
    flops = 2 * Bp * Kp * 4 * Hp + 2 * Bp * Hp * Rp
    bytes_accessed = (xh.size * itemsz + c_p.size * 4
                      + params["w_gates"].size * itemsz
                      + params["bias"].size * 4
                      + params["wrec_t"].size * itemsz
                      + Bp * Rp * 4 + Bp * Hp * 4)
    cost = pl.CostEstimate(flops=flops, transcendentals=5 * Bp * Hp,
                           bytes_accessed=bytes_accessed)

    h_out, c_out = pl.pallas_call(
        lstmp_kernel,
        out_shape=(
            jax.ShapeDtypeStruct((Bp, Rp), jnp.float32),
            jax.ShapeDtypeStruct((Bp, Hp), jnp.float32),
        ),
        grid=grid,
        in_specs=[
            act_spec(Kp),              # xh   (streamed per batch tile)
            act_spec(Hp),              # c    (streamed per batch tile)
            pinned((Kp, 4 * Hp)),      # fused gate weights (VMEM-resident)
            pinned((1, 4 * Hp)),       # bias
            pinned((Hp, Rp)),          # recurrent projection weights
        ],
        out_specs=(
            act_spec(Rp),              # h'
            act_spec(Hp),              # c'
        ),
        compiler_params=pltpu.CompilerParams(
            dimension_semantics=("parallel",)),
        cost_estimate=cost,
    )(xh, c_p, params["w_gates"], params["bias"], params["wrec_t"])

    h_new = h_out[:B, :R].astype(out_dtype)
    c_new = c_out[:B, :H].astype(out_dtype)
    return h_new, c_new


def lstmp_cell(x, h, c, weight_ih, weight_hh, weight_rec, bias,
               compute_dtype=jnp.bfloat16):
    """Convenience wrapper: prepare weights + run one cell step."""
    params = prepare_lstmp_params(weight_ih, weight_hh, weight_rec, bias,
                                  compute_dtype=compute_dtype)
    return lstmp_cell_prepared(x, h, c, params)


def reference_lstmp(x, h, c, weight_ih, weight_hh, weight_rec, bias):
    """Pure-JAX f32 reference mirroring the PyTorch forward."""
    H = weight_ih.shape[0] // 4
    pre = x @ weight_ih.T + bias + h @ weight_hh.T
    i = jax.nn.sigmoid(pre[:, :H])
    f = jax.nn.sigmoid(pre[:, H:2 * H])
    g = jnp.tanh(pre[:, 2 * H:3 * H])
    o = jax.nn.sigmoid(pre[:, 3 * H:])
    c_new = f * c + i * g
    h_new = (o * jnp.tanh(c_new)) @ weight_rec.T
    return h_new, c_new


if __name__ == "__main__":
    # Small deterministic shapes consistent with the module's forward.
    B = 2
    input_size = 24
    hidden_size = 32
    recurrent_size = 16

    key = jax.random.PRNGKey(0)
    k_wih, k_whh, k_wrec, k_b, k_x, k_h, k_c = jax.random.split(key, 7)

    # reset_parameters(): uniform(-stdv, stdv) with stdv = 1/sqrt(hidden_size)
    stdv = 1.0 / math.sqrt(hidden_size)
    weight_ih = jax.random.uniform(k_wih, (4 * hidden_size, input_size),
                                   jnp.float32, -stdv, stdv)
    weight_hh = jax.random.uniform(k_whh, (4 * hidden_size, recurrent_size),
                                   jnp.float32, -stdv, stdv)
    weight_rec = jax.random.uniform(k_wrec, (recurrent_size, hidden_size),
                                    jnp.float32, -stdv, stdv)
    bias = jax.random.uniform(k_b, (4 * hidden_size,), jnp.float32, -stdv, stdv)

    x = jax.random.normal(k_x, (B, input_size), jnp.float32)
    h0 = jax.random.normal(k_h, (B, recurrent_size), jnp.float32)
    c0 = jax.random.normal(k_c, (B, hidden_size), jnp.float32)

    h_ref, c_ref = reference_lstmp(x, h0, c0, weight_ih, weight_hh,
                                   weight_rec, bias)

    # 1) Exact-semantics check: f32 compute path must match tightly.
    params_f32 = prepare_lstmp_params(weight_ih, weight_hh, weight_rec, bias,
                                      compute_dtype=jnp.float32)
    h_f32, c_f32 = lstmp_cell_prepared(x, h0, c0, params_f32)
    jax.block_until_ready((h_f32, c_f32))
    assert h_f32.shape == (B, recurrent_size) and c_f32.shape == (B, hidden_size)
    assert jnp.allclose(h_f32, h_ref, atol=1e-5, rtol=1e-5)
    assert jnp.allclose(c_f32, c_ref, atol=1e-5, rtol=1e-5)

    # 2) Fast path: bf16 matmul operands + f32 accumulation / f32 gate math.
    params_bf16 = prepare_lstmp_params(weight_ih, weight_hh, weight_rec, bias,
                                       compute_dtype=jnp.bfloat16)
    h_new, c_new = lstmp_cell_prepared(x, h0, c0, params_bf16)
    jax.block_until_ready((h_new, c_new))
    assert h_new.shape == (B, recurrent_size) and c_new.shape == (B, hidden_size)
    assert jnp.allclose(h_new, h_ref, atol=2e-2, rtol=2e-2)
    assert jnp.allclose(c_new, c_ref, atol=2e-2, rtol=2e-2)

    print("KERNEL_OK")
</pallas_src>

<mosaic_0001>
module attributes {stable_mosaic.version = 11 : i64} {
  func.func @lstmp_kernel(%arg0: i32, %arg1: memref<8x128xf32, #tpu.memory_space<vmem>>, %arg2: memref<8x128xf32, #tpu.memory_space<vmem>>, %arg3: memref<128x512xf32, #tpu.memory_space<vmem>>, %arg4: memref<1x512xf32, #tpu.memory_space<vmem>>, %arg5: memref<128x128xf32, #tpu.memory_space<vmem>>, %arg6: memref<8x128xf32, #tpu.memory_space<vmem>>, %arg7: memref<8x128xf32, #tpu.memory_space<vmem>>) attributes {dimension_semantics = [#tpu.dimension_semantics<parallel>], iteration_bounds = array<i64: 1>, scalar_prefetch = 0 : i64, scratch_operands = 0 : i64, tpu.core_type = #tpu.core_type<tc>, window_params = [{transform_indices = @transform_0, window_bounds = array<i64: 8, 128>}, {transform_indices = @transform_1, window_bounds = array<i64: 8, 128>}, {pipeline_mode = #tpu.pipeline_mode<synchronous>, transform_indices = @transform_2, window_bounds = array<i64: 128, 512>}, {pipeline_mode = #tpu.pipeline_mode<synchronous>, transform_indices = @transform_3, window_bounds = array<i64: 1, 512>}, {pipeline_mode = #tpu.pipeline_mode<synchronous>, transform_indices = @transform_4, window_bounds = array<i64: 128, 128>}, {transform_indices = @transform_5, window_bounds = array<i64: 8, 128>}, {transform_indices = @transform_6, window_bounds = array<i64: 8, 128>}]} {
    %c0 = arith.constant 0 : index
    %c0_0 = arith.constant 0 : index
    %0 = vector.load %arg1[%c0, %c0_0] : memref<8x128xf32, #tpu.memory_space<vmem>>, vector<8x128xf32>
    %c0_1 = arith.constant 0 : index
    %c0_2 = arith.constant 0 : index
    %1 = vector.load %arg3[%c0_1, %c0_2] : memref<128x512xf32, #tpu.memory_space<vmem>>, vector<128x512xf32>
    %cst = arith.constant dense<0.000000e+00> : vector<8x512xf32>
    %2 = tpu.matmul %0, %1, %cst {dimension_numbers = #tpu.dot_dimension_numbers<[1], [0], [0], [1], [0, 0, 1, 1], [], []>} : vector<8x128xf32>, vector<128x512xf32>, vector<8x512xf32> -> vector<8x512xf32>
    %c0_3 = arith.constant 0 : index
    %c0_4 = arith.constant 0 : index
    %3 = vector.load %arg4[%c0_3, %c0_4] : memref<1x512xf32, #tpu.memory_space<vmem>>, vector<1x512xf32>
    %4 = vector.broadcast %3 : vector<1x512xf32> to vector<8x512xf32>
    %5 = arith.addf %2, %4 : vector<8x512xf32>
    %6 = vector.extract_strided_slice %5 {offsets = [0, 0], sizes = [8, 128], strides = [1, 1]} : vector<8x512xf32> to vector<8x128xf32>
    %7 = arith.negf %6 : vector<8x128xf32>
    %8 = math.exp %7 : vector<8x128xf32>
    %cst_5 = arith.constant 1.000000e+00 : f32
    %9 = vector.broadcast %cst_5 : f32 to vector<8x128xf32>
    %10 = arith.addf %9, %8 : vector<8x128xf32>
    %11 = arith.divf %9, %10 : vector<8x128xf32>
    %12 = vector.extract_strided_slice %5 {offsets = [0, 128], sizes = [8, 128], strides = [1, 1]} : vector<8x512xf32> to vector<8x128xf32>
    %13 = arith.negf %12 : vector<8x128xf32>
    %14 = math.exp %13 : vector<8x128xf32>
    %cst_6 = arith.constant 1.000000e+00 : f32
    %15 = vector.broadcast %cst_6 : f32 to vector<8x128xf32>
    %16 = arith.addf %15, %14 : vector<8x128xf32>
    %17 = arith.divf %15, %16 : vector<8x128xf32>
    %18 = vector.extract_strided_slice %5 {offsets = [0, 256], sizes = [8, 128], strides = [1, 1]} : vector<8x512xf32> to vector<8x128xf32>
    %19 = math.tanh %18 : vector<8x128xf32>
    %20 = vector.extract_strided_slice %5 {offsets = [0, 384], sizes = [8, 128], strides = [1, 1]} : vector<8x512xf32> to vector<8x128xf32>
    %21 = arith.negf %20 : vector<8x128xf32>
    %22 = math.exp %21 : vector<8x128xf32>
    %cst_7 = arith.constant 1.000000e+00 : f32
    %23 = vector.broadcast %cst_7 : f32 to vector<8x128xf32>
    %24 = arith.addf %23, %22 : vector<8x128xf32>
    %25 = arith.divf %23, %24 : vector<8x128xf32>
    %c0_8 = arith.constant 0 : index
    %c0_9 = arith.constant 0 : index
    %26 = vector.load %arg2[%c0_8, %c0_9] : memref<8x128xf32, #tpu.memory_space<vmem>>, vector<8x128xf32>
    %27 = arith.mulf %17, %26 : vector<8x128xf32>
    %28 = arith.mulf %11, %19 : vector<8x128xf32>
    %29 = arith.addf %27, %28 : vector<8x128xf32>
    %30 = math.tanh %29 : vector<8x128xf32>
    %31 = arith.mulf %25, %30 : vector<8x128xf32>
    %c0_10 = arith.constant 0 : index
    %c0_11 = arith.constant 0 : index
    %32 = vector.load %arg5[%c0_10, %c0_11] : memref<128x128xf32, #tpu.memory_space<vmem>>, vector<128x128xf32>
    %cst_12 = arith.constant dense<0.000000e+00> : vector<8x128xf32>
    %33 = tpu.matmul %31, %32, %cst_12 {dimension_numbers = #tpu.dot_dimension_numbers<[1], [0], [0], [1], [0, 0, 1, 1], [], []>} : vector<8x128xf32>, vector<128x128xf32>, vector<8x128xf32> -> vector<8x128xf32>
    %c0_13 = arith.constant 0 : index
    %c0_14 = arith.constant 0 : index
    %34 = vector.load %arg6[%c0_13, %c0_14] : memref<8x128xf32, #tpu.memory_space<vmem>>, vector<8x128xf32>
    tpu.vector_store %arg6[%c0_13, %c0_14], %33 {strides = array<i32>} : memref<8x128xf32, #tpu.memory_space<vmem>>, vector<8x128xf32>,
    %c0_15 = arith.constant 0 : index
    %c0_16 = arith.constant 0 : index
    %35 = vector.load %arg7[%c0_15, %c0_16] : memref<8x128xf32, #tpu.memory_space<vmem>>, vector<8x128xf32>
    tpu.vector_store %arg7[%c0_15, %c0_16], %29 {strides = array<i32>} : memref<8x128xf32, #tpu.memory_space<vmem>>, vector<8x128xf32>,
    return
  }
  func.func @transform_0(%arg0: i32) -> (i32, i32) {
    %c0_i32 = arith.constant 0 : i32
    %c0_i32_0 = arith.constant 0 : i32
    return %arg0, %c0_i32 : i32, i32
  }
  func.func @transform_1(%arg0: i32) -> (i32, i32) {
    %c0_i32 = arith.constant 0 : i32
    %c0_i32_0 = arith.constant 0 : i32
    return %arg0, %c0_i32 : i32, i32
  }
  func.func @transform_2(%arg0: i32) -> (i32, i32) {
    %c0_i32 = arith.constant 0 : i32
    %c0_i32_0 = arith.constant 0 : i32
    %c0_i32_1 = arith.constant 0 : i32
    return %c0_i32, %c0_i32_0 : i32, i32
  }
  func.func @transform_3(%arg0: i32) -> (i32, i32) {
    %c0_i32 = arith.constant 0 : i32
    %c0_i32_0 = arith.constant 0 : i32
    %c0_i32_1 = arith.constant 0 : i32
    return %c0_i32, %c0_i32_0 : i32, i32
  }
  func.func @transform_4(%arg0: i32) -> (i32, i32) {
    %c0_i32 = arith.constant 0 : i32
    %c0_i32_0 = arith.constant 0 : i32
    %c0_i32_1 = arith.constant 0 : i32
    return %c0_i32, %c0_i32_0 : i32, i32
  }
  func.func @transform_5(%arg0: i32) -> (i32, i32) {
    %c0_i32 = arith.constant 0 : i32
    %c0_i32_0 = arith.constant 0 : i32
    return %arg0, %c0_i32 : i32, i32
  }
  func.func @transform_6(%arg0: i32) -> (i32, i32) {
    %c0_i32 = arith.constant 0 : i32
    %c0_i32_0 = arith.constant 0 : i32
    return %arg0, %c0_i32 : i32, i32
  }
}

</mosaic_0001>

<bundles_post_ra>
// kernel: tpu_custom_call.1
= control target key start
LH: loop header
LB: loop body
LE: loop exit
PB: predicated region body
PF: predicated region fallthrough
CT: control target
= control target key end

     0   :  { %12 = vsyncpa [#allocation3], 0  ;;  %s748_s0 = inlined_call_operand.hbm [shape: f32[8,128], index: 0, kind: input, shape index: {}]   ;;  %s749_s1 = inlined_call_operand.hbm [shape: f32[8,128], index: 1, kind: input, shape index: {}]   ;;  %s750_s2 = inlined_call_operand.hbm [shape: f32[128,512], index: 2, kind: input, shape index: {}]   ;;  %s751_s3 = inlined_call_operand.vmem [shape: f32[1,512], index: 3, kind: input, shape index: {}]   ;;  %s752_s4 = inlined_call_operand.hbm [shape: f32[128,128], index: 4, kind: input, shape index: {}]   ;;  %s753_s5 = inlined_call_operand.hbm [shape: f32[8,128], index: 5, kind: output, shape index: {0}]   ;;  %s754_s6 = inlined_call_operand.hbm [shape: f32[8,128], index: 6, kind: output, shape index: {1}]  }
   0x1   :  { %13 = vsyncpa [#allocation6], 0 }
   0x2   :  { %14 = vsyncpa [#allocation9], 0 }
   0x3   :  { %15 = vsyncpa [#allocation4], 0 }
   0x4   :  { %16 = vsyncpa [#allocation12], 0  ;;  %s661_s21 = smov [#allocation5]   ;;  %s662_s23 = smov [#allocation2]  }
   0x5   :  { %s33_s22 = sshll.u32 %s661_s21, 4  ;;  %s23_s24 = sshll.u32 %s662_s23, 4  ;;  %s34_s22 = int_to_ptr.vmem [resolvable:$true] %s33_s22  ;;  %s24_s24 = int_to_ptr.vmem [resolvable:$true] %s23_s24 }
   0x6   :  { %s539_s25 = scalar_lea.vmem %s34_s22, 128  ;;  %p544_p1 = scmp.lt.s32.totalorder %s34_s22, %s34_s22 }
   0x7   :  { %p540_p0 = scmp.ne.s32.totalorder %s34_s22, %s539_s25  ;;  %p545_p2 = scmp.lt.s32.totalorder %s539_s25, %s539_s25 }
   0x9   :  { %p546_p3 = por %p545_p2, %p544_p1 }
   0xb   :  { %p547_p4 = pnand %p546_p3, %p540_p0 }
   0xd   :  { %550 = shalt.err (!%p547_p4)
}
   0xe   :  { %36 = dma.hbm_to_vmem [thread:$0]  %s749_s1, 128, %s34_s22, [#allocation6]  }
   0xf   :  { %s559_s28 = scalar_lea.vmem %s24_s24, 128  ;;  %p564_p6 = scmp.lt.s32.totalorder %s24_s24, %s24_s24 }
  0x10   :  { %p560_p5 = scmp.ne.s32.totalorder %s24_s24, %s559_s28  ;;  %p565_p7 = scmp.lt.s32.totalorder %s559_s28, %s559_s28 }
  0x12   :  { %p566_p8 = por %p565_p7, %p564_p6 }
  0x14   :  { %p567_p9 = pnand %p566_p8, %p560_p5 }
  0x16   :  { %570 = shalt.err (!%p567_p9)
}
  0x17   :  { %26 = dma.hbm_to_vmem [thread:$0]  %s748_s0, 128, %s24_s24, [#allocation3]  }
  0x18   :  { %s663_s7 = smov [#allocation7]  }
  0x19   :  { %s42_s8 = sshll.u32 %s663_s7, 4  ;;  %s43_s8 = int_to_ptr.vmem [resolvable:$true] %s42_s8 }
  0x1a   :  { %s579_s9 = scalar_lea.vmem %s43_s8, 8192  ;;  %p584_p11 = scmp.lt.s32.totalorder %s43_s8, %s43_s8 }
  0x1b   :  { %p580_p10 = scmp.ne.s32.totalorder %s43_s8, %s579_s9  ;;  %p585_p12 = scmp.lt.s32.totalorder %s579_s9, %s579_s9 }
  0x1d   :  { %p586_p13 = por %p585_p12, %p584_p11 }
  0x1f   :  { %p587_p0 = pnand %p586_p13, %p580_p10 }
  0x21   :  { %590 = shalt.err (!%p587_p0)
}
  0x22   :  { %s664_s1 = smov 512   ;;  %s665_s10 = smov 32  }
  0x23   :  { %48 = dma.hbm_to_vmem [thread:$0]  %s750_s2, 8192, %s43_s8, [#allocation6], %s664_s1, %s664_s1, %s665_s10  }
  0x24   :  { %s666_s13 = smov [#allocation8]  }
  0x25   :  { %s56_s14 = sshll.u32 %s666_s13, 4  ;;  %s57_s14 = int_to_ptr.vmem [resolvable:$true] %s56_s14 }
  0x26   :  { %s599_s0 = scalar_lea.vmem %s57_s14, 2048  ;;  %p604_p2 = scmp.lt.s32.totalorder %s57_s14, %s57_s14 }
  0x27   :  { %p600_p1 = scmp.ne.s32.totalorder %s57_s14, %s599_s0  ;;  %p605_p3 = scmp.lt.s32.totalorder %s599_s0, %s599_s0 }
  0x29   :  { %p606_p4 = por %p605_p3, %p604_p2 }
  0x2b   :  { %p607_p5 = pnand %p606_p4, %p600_p1 }
  0x2d   :  { %610 = shalt.err (!%p607_p5)
}
  0x2e   :  { %s667_s15 = smov 128   ;;  %s668_s16 = smov 8  }
  0x2f   :  { %62 = dma.hbm_to_vmem [thread:$0]  %s752_s4, 2048, %s57_s14, [#allocation9], %s667_s15, %s667_s15, %s668_s16  }
  0x30   :  { %651 = dma.done.wait [#allocation3], 128  }
  0x31   :  { %652 = vsyncadd [#allocation3], 4294967168 }
  0x32   :  { %653 = dma.done.wait [#allocation6], 8320  }
  0x33   :  { %654 = vsyncadd [#allocation6], 4294958976 }
  0x34   :  { %655 = dma.done.wait [#allocation9], 2048  }
  0x35   :  { %656 = vsyncadd [#allocation9], 4294965248  ;;  %v669_v0 = vmov 0.0   ;;  %v137_v1 = vld [vmem:[#allocation7 + $0x1e8] sm:$0xff]  ;;  %v136_v2 = vld [vmem:[#allocation7 + $0x1e0] sm:$0xff]  ;;  %vm670_vm0 = vmmov 0  }
  0x36   :  { %226 = vmatprep.mubr.f32.mxu0 %v669_v0  ;;  %297 = vmatprep.mubr.f32.mxu1 %v669_v0  ;;  %v133_v3 = vld [vmem:[#allocation7 + $0x1c8] sm:$0xff]  ;;  %v132_v4 = vld [vmem:[#allocation7 + $0x1c0] sm:$0xff]  ;;  %v139_v9 = vld [vmem:[#allocation7 + $0x1f8] sm:$0xff] }
  0x37   :  { %162 = vmatprep.subr.mxu0 %v137_v1  ;;  %v129_v5 = vld [vmem:[#allocation7 + $0x1a8] sm:$0xff]  ;;  %v128_v6 = vld [vmem:[#allocation7 + $0x1a0] sm:$0xff]  ;;  %233 = vmatprep.subr.mxu1 %v139_v9  ;;  %v138_v11 = vld [vmem:[#allocation7 + $0x1f0] sm:$0xff] }
  0x38   :  { %163 = vmatpush1.msra.mxu0 %v136_v2  ;;  %v125_v7 = vld [vmem:[#allocation7 + $0x188] sm:$0xff]  ;;  %v124_v8 = vld [vmem:[#allocation7 + $0x180] sm:$0xff]  ;;  %234 = vmatpush1.msra.mxu1 %v138_v11  ;;  %v135_v13 = vld [vmem:[#allocation7 + $0x1d8] sm:$0xff] }
  0x39   :  { %164 = vmatprep.subr.mxu0 %v133_v3  ;;  %v121_v10 = vld [vmem:[#allocation7 + $0x168] sm:$0xff]  ;;  %v120_v12 = vld [vmem:[#allocation7 + $0x160] sm:$0xff]  ;;  %v134_v14 = vld [vmem:[#allocation7 + $0x1d0] sm:$0xff]  ;;  %235 = vmatprep.subr.mxu1 %v135_v13 }
  0x3a   :  { %165 = vmatpush1.msra.mxu0 %v132_v4  ;;  %v117_v15 = vld [vmem:[#allocation7 + $0x148] sm:$0xff]  ;;  %v131_v16 = vld [vmem:[#allocation7 + $0x1b8] sm:$0xff]  ;;  %v116_v17 = vld [vmem:[#allocation7 + $0x140] sm:$0xff]  ;;  %236 = vmatpush1.msra.mxu1 %v134_v14 }
  0x3b   :  { %166 = vmatprep.subr.mxu0 %v129_v5  ;;  %v130_v18 = vld [vmem:[#allocation7 + $0x1b0] sm:$0xff]  ;;  %v127_v19 = vld [vmem:[#allocation7 + $0x198] sm:$0xff]  ;;  %v113_v20 = vld [vmem:[#allocation7 + $0x128] sm:$0xff]  ;;  %237 = vmatprep.subr.mxu1 %v131_v16 }
  0x3c   :  { %167 = vmatpush1.msra.mxu0 %v128_v6  ;;  %v126_v21 = vld [vmem:[#allocation7 + $0x190] sm:$0xff]  ;;  %v112_v22 = vld [vmem:[#allocation7 + $0x120] sm:$0xff]  ;;  %238 = vmatpush1.msra.mxu1 %v130_v18  ;;  %v123_v23 = vld [vmem:[#allocation7 + $0x178] sm:$0xff] }
  0x3d   :  { %168 = vmatprep.subr.mxu0 %v125_v7  ;;  %v109_v24 = vld [vmem:[#allocation7 + $0x108] sm:$0xff]  ;;  %239 = vmatprep.subr.mxu1 %v127_v19  ;;  %v122_v25 = vld [vmem:[#allocation7 + $0x170] sm:$0xff]  ;;  %v108_v26 = vld [vmem:[#allocation7 + $0x100] sm:$0xff]  ;;  %v142_v19 = vlaneseq }
  0x3e   :  { %169 = vmatpush1.msra.mxu0 %v124_v8  ;;  %240 = vmatpush1.msra.mxu1 %v126_v21  ;;  %v119_v27 = vld [vmem:[#allocation7 + $0x158] sm:$0xff]  ;;  %v105_v28 = vld [vmem:[#allocation7 + $0xe8] sm:$0xff]  ;;  %v118_v29 = vld [vmem:[#allocation7 + $0x150] sm:$0xff] }
  0x3f   :  { %170 = vmatprep.subr.mxu0 %v121_v10  ;;  %241 = vmatprep.subr.mxu1 %v123_v23  ;;  %v104_v30 = vld [vmem:[#allocation7 + $0xe0] sm:$0xff]  ;;  %v115_v31 = vld [vmem:[#allocation7 + $0x138] sm:$0xff]  ;;  %v101_v32 = vld [vmem:[#allocation7 + $0xc8] sm:$0xff] }
  0x40   :  { %171 = vmatpush1.msra.mxu0 %v120_v12  ;;  %242 = vmatpush1.msra.mxu1 %v122_v25  ;;  %v114_v33 = vld [vmem:[#allocation7 + $0x130] sm:$0xff]  ;;  %v100_v34 = vld [vmem:[#allocation7 + $0xc0] sm:$0xff]  ;;  %v111_v35 = vld [vmem:[#allocation7 + $0x118] sm:$0xff] }
  0x41   :  { %172 = vmatprep.subr.mxu0 %v117_v15  ;;  %243 = vmatprep.subr.mxu1 %v119_v27  ;;  %v97_v36 = vld [vmem:[#allocation7 + $0xa8] sm:$0xff]  ;;  %v110_v37 = vld [vmem:[#allocation7 + $0x110] sm:$0xff]  ;;  %v96_v38 = vld [vmem:[#allocation7 + $0xa0] sm:$0xff] }
  0x42   :  { %173 = vmatpush1.msra.mxu0 %v116_v17  ;;  %244 = vmatpush1.msra.mxu1 %v118_v29  ;;  %v107_v39 = vld [vmem:[#allocation7 + $0xf8] sm:$0xff]  ;;  %v93_v40 = vld [vmem:[#allocation7 + $0x88] sm:$0xff]  ;;  %v106_v41 = vld [vmem:[#allocation7 + $0xf0] sm:$0xff] }
  0x43   :  { %174 = vmatprep.subr.mxu0 %v113_v20  ;;  %245 = vmatprep.subr.mxu1 %v115_v31  ;;  %v92_v42 = vld [vmem:[#allocation7 + $0x80] sm:$0xff]  ;;  %v103_v43 = vld [vmem:[#allocation7 + $0xd8] sm:$0xff]  ;;  %v89_v44 = vld [vmem:[#allocation7 + $0x68] sm:$0xff]  ;;  %v143_v20 = vshrl.u32 %v142_v19, 7 }
  0x44   :  { %175 = vmatpush1.msra.mxu0 %v112_v22  ;;  %246 = vmatpush1.msra.mxu1 %v114_v33  ;;  %v102_v45 = vld [vmem:[#allocation7 + $0xd0] sm:$0xff]  ;;  %v88_v46 = vld [vmem:[#allocation7 + $0x60] sm:$0xff]  ;;  %v99_v47 = vld [vmem:[#allocation7 + $0xb8] sm:$0xff] }
  0x45   :  { %176 = vmatprep.subr.mxu0 %v109_v24  ;;  %247 = vmatprep.subr.mxu1 %v111_v35  ;;  %v85_v48 = vld [vmem:[#allocation7 + $0x48] sm:$0xff]  ;;  %v98_v49 = vld [vmem:[#allocation7 + $0xb0] sm:$0xff]  ;;  %v84_v50 = vld [vmem:[#allocation7 + $0x40] sm:$0xff]  ;;  %v144_v21 = vsub.s32 0, %v143_v20  ;;  %v148_v23 = vsub.s32 1, %v143_v20  ;;  %v156_v31 = vsub.s32 3, %v143_v20 }
  0x46   :  { %177 = vmatpush1.msra.mxu0 %v108_v26  ;;  %248 = vmatpush1.msra.mxu1 %v110_v37  ;;  %v95_v51 = vld [vmem:[#allocation7 + $0x98] sm:$0xff]  ;;  %v81_v52 = vld [vmem:[#allocation7 + $0x28] sm:$0xff]  ;;  %v94_v53 = vld [vmem:[#allocation7 + $0x90] sm:$0xff]  ;;  %v152_v33 = vsub.s32 2, %v143_v20 }
  0x47   :  { %178 = vmatprep.subr.mxu0 %v105_v28  ;;  %249 = vmatprep.subr.mxu1 %v107_v39  ;;  %v80_v54 = vld [vmem:[#allocation7 + $0x20] sm:$0xff]  ;;  %v91_v55 = vld [vmem:[#allocation7 + $0x78] sm:$0xff]  ;;  %v77_v56 = vld [vmem:[#allocation7 + $0x8] sm:$0xff] }
  0x48   :  { %179 = vmatpush1.msra.mxu0 %v104_v30  ;;  %250 = vmatpush1.msra.mxu1 %v106_v41  ;;  %v90_v57 = vld [vmem:[#allocation7 + $0x70] sm:$0xff]  ;;  %v76_v58 = vld [vmem:[#allocation7] sm:$0xff]  ;;  %v87_v59 = vld [vmem:[#allocation7 + $0x58] sm:$0xff] }
  0x49   :  { %180 = vmatprep.subr.mxu0 %v101_v32  ;;  %251 = vmatprep.subr.mxu1 %v103_v43  ;;  %v75_v60 = vld [vmem:[#allocation2] sm:$0xff]  ;;  %v83_v62 = vld [vmem:[#allocation7 + $0x38] sm:$0xff]  ;;  %v342_v5 = vld [vmem:[#allocation8 + $0x68] sm:$0xff] }
  0x4a   :  { %181 = vmatpush1.msra.mxu0 %v100_v34  ;;  %252 = vmatpush1.msra.mxu1 %v102_v45  ;;  %v86_v61 = vld [vmem:[#allocation7 + $0x50] sm:$0xff]  ;;  %v79_v1 = vld [vmem:[#allocation7 + $0x18] sm:$0xff]  ;;  %v341_v6 = vld [vmem:[#allocation8 + $0x60] sm:$0xff] }
  0x4b   :  { %182 = vmatprep.subr.mxu0 %v97_v36  ;;  %253 = vmatprep.subr.mxu1 %v99_v47  ;;  %v82_v63 = vld [vmem:[#allocation7 + $0x30] sm:$0xff]  ;;  %v344_v3 = vld [vmem:[#allocation8 + $0x78] sm:$0xff]  ;;  %v338_v9 = vld [vmem:[#allocation8 + $0x48] sm:$0xff] }
  0x4c   :  { %183 = vmatpush1.msra.mxu0 %v96_v38  ;;  %254 = vmatpush1.msra.mxu1 %v98_v49  ;;  %v78_v2 = vld [vmem:[#allocation7 + $0x10] sm:$0xff]  ;;  %v340_v7 = vld [vmem:[#allocation8 + $0x58] sm:$0xff]  ;;  %v337_v10 = vld [vmem:[#allocation8 + $0x40] sm:$0xff] }
  0x4d   :  { %184 = vmatprep.subr.mxu0 %v93_v40  ;;  %255 = vmatprep.subr.mxu1 %v95_v51  ;;  %v343_v4 = vld [vmem:[#allocation8 + $0x70] sm:$0xff]  ;;  %v336_v11 = vld [vmem:[#allocation8 + $0x38] sm:$0xff]  ;;  %v334_v13 = vld [vmem:[#allocation8 + $0x28] sm:$0xff] }
  0x4e   :  { %185 = vmatpush1.msra.mxu0 %v92_v42  ;;  %256 = vmatpush1.msra.mxu1 %v94_v53  ;;  %v339_v8 = vld [vmem:[#allocation8 + $0x50] sm:$0xff]  ;;  %v333_v14 = vld [vmem:[#allocation8 + $0x20] sm:$0xff]  ;;  %v332_v15 = vld [vmem:[#allocation8 + $0x18] sm:$0xff] }
  0x4f   :  { %186 = vmatprep.subr.mxu0 %v89_v44  ;;  %257 = vmatprep.subr.mxu1 %v91_v55  ;;  %v335_v12 = vld [vmem:[#allocation8 + $0x30] sm:$0xff]  ;;  %v330_v17 = vld [vmem:[#allocation8 + $0x8] sm:$0xff]  ;;  %v329_v18 = vld [vmem:[#allocation8] sm:$0xff] }
  0x50   :  { %187 = vmatpush1.msra.mxu0 %v88_v46  ;;  %258 = vmatpush1.msra.mxu1 %v90_v57  ;;  %v331_v16 = vld [vmem:[#allocation8 + $0x10] sm:$0xff]  ;;  %v323_v47 = vld [vmem:[#allocation5] sm:$0xff] }
  0x51   :  { %188 = vmatprep.subr.mxu0 %v85_v48  ;;  %259 = vmatprep.subr.mxu1 %v87_v59  ;;  %v140_v22 = vld [vmem:[%s751_s3] sm:$0xf]  ;;  %s671_s3 = smov [#allocation11]  }
  0x52   :  { %189 = vmatpush1.msra.mxu0 %v84_v50  ;;  %260 = vmatpush1.msra.mxu1 %v86_v61  ;;  %v145_v24 = vrot.slane %v140_v22, %v144_v21  ;;  %v149_v25 = vrot.slane %v140_v22, %v148_v23  ;;  %v157_v34 = vrot.slane %v140_v22, %v156_v31  ;;  %s433_s19 = sshll.u32 %s671_s3, 4  ;;  %s434_s19 = int_to_ptr.vmem [resolvable:$true] %s433_s19 }
  0x53   :  { %190 = vmatprep.subr.mxu0 %v81_v52  ;;  %261 = vmatprep.subr.mxu1 %v83_v62  ;;  %v153_v36 = vrot.slane %v140_v22, %v152_v33  ;;  %s611_s20 = scalar_lea.vmem %s434_s19, 128  ;;  %p616_p7 = scmp.lt.s32.totalorder %s434_s19, %s434_s19 }
  0x54   :  { %191 = vmatpush1.msra.mxu0 %v80_v54  ;;  %262 = vmatpush1.msra.mxu1 %v82_v63  ;;  %p612_p6 = scmp.ne.s32.totalorder %s434_s19, %s611_s20  ;;  %p617_p8 = scmp.lt.s32.totalorder %s611_s20, %s611_s20 }
  0x55   :  { %192 = vmatprep.subr.mxu0 %v77_v56  ;;  %263 = vmatprep.subr.mxu1 %v79_v1 }
  0x56   :  { %193 = vmatpush1.msra.mxu0 %v76_v58  ;;  %264 = vmatpush1.msra.mxu1 %v78_v2  ;;  %p618_p9 = por %p617_p8, %p616_p7 }
  0x57   :  { %227 = vmatmul.mubr.f32.vlgmr.msra.gmra.mxu0 %v75_v60  ;;  %468 = vmatprep.subr.mxu0 %v669_v0 }
  0x58   :  { %298 = vmatmul.mubr.f32.vlgmr.msra.gmra.mxu1 %v75_v60  ;;  %469 = vmatpush3.msra.mxu0 %v344_v3  ;;  %p619_p10 = pnand %p618_p9, %p612_p6 }
  0x59   :  { %470 = vmatprep.subr.mxu0 %v669_v0  ;;  %500 = vmatprep.mubr.msk.f32.mxu0 %vm670_vm0, %v669_v0 }
  0x5a   :  { %471 = vmatpush3.msra.mxu0 %v343_v4 }
  0x5b   :  { %472 = vmatprep.subr.mxu0 %v669_v0 }
  0x5c   :  { %473 = vmatpush3.msra.mxu0 %v342_v5 }
  0x5d   :  { %474 = vmatprep.subr.mxu0 %v669_v0 }
  0x5e   :  { %475 = vmatpush3.msra.mxu0 %v341_v6 }
  0x5f   :  { %476 = vmatprep.subr.mxu0 %v669_v0 }
  0x60   :  { %477 = vmatpush3.msra.mxu0 %v340_v7 }
  0x61   :  { %478 = vmatprep.subr.mxu0 %v669_v0 }
  0x62   :  { %479 = vmatpush3.msra.mxu0 %v339_v8 }
  0x63   :  { %480 = vmatprep.subr.mxu0 %v669_v0 }
  0x64   :  { %481 = vmatpush3.msra.mxu0 %v338_v9 }
  0x65   :  { %482 = vmatprep.subr.mxu0 %v669_v0 }
  0x66   :  { %483 = vmatpush3.msra.mxu0 %v337_v10 }
  0x67   :  { %484 = vmatprep.subr.mxu0 %v669_v0 }
  0x68   :  { %485 = vmatpush3.msra.mxu0 %v336_v11 }
  0x69   :  { %486 = vmatprep.subr.mxu0 %v669_v0 }
  0x6a   :  { %487 = vmatpush3.msra.mxu0 %v335_v12 }
  0x6b   :  { %488 = vmatprep.subr.mxu0 %v669_v0 }
  0x6c   :  { %489 = vmatpush3.msra.mxu0 %v334_v13 }
  0x6d   :  { %490 = vmatprep.subr.mxu0 %v669_v0 }
  0x6e   :  { %491 = vmatpush3.msra.mxu0 %v333_v14 }
  0x6f   :  { %492 = vmatprep.subr.mxu0 %v669_v0 }
  0x70   :  { %493 = vmatpush3.msra.mxu0 %v332_v15 }
  0x71   :  { %494 = vmatprep.subr.mxu0 %v669_v0 }
  0x72   :  { %495 = vmatpush3.msra.mxu0 %v331_v16 }
  0x73   :  { %496 = vmatprep.subr.mxu0 %v669_v0 }
  0x74   :  { %497 = vmatpush3.msra.mxu0 %v330_v17 }
  0x75   :  { %498 = vmatprep.subr.mxu0 %v669_v0 }
  0x76   :  { %499 = vmatpush3.msra.mxu0 %v329_v18 }
 0x117   :  { %v228_v26 = vpop.f32.mrf.mxu0 }
 0x118   :  { %v229_v27 = vadd.f32 %v228_v26, %v145_v24  ;;  %v299_v0 = vpop.f32.mrf.mxu1 }
 0x119   :  { %v230_v28 = vpop.f32.mrf.mxu0  ;;  %v300_v38 = vadd.f32 %v299_v0, %v153_v36 }
 0x11a   :  { %v448_v29 = vmul.f32 -1.442695, %v229_v27  ;;  %v231_v30 = vadd.f32 %v230_v28, %v149_v25  ;;  %v301_v35 = vpop.f32.mrf.mxu1 }
 0x11b   :  { %v302_v37 = vadd.f32 %v301_v35, %v157_v34 }
 0x11c   :  { %515 = vpow2.f32 %v448_v29  ;;  %v449_v32 = vmul.f32 -1.442695, %v231_v30 }
 0x11d   :  { %v450_v39 = vmul.f32 -1.442695, %v302_v37 }
 0x11e   :  { %517 = vpow2.f32 %v449_v32 }
 0x11f   :  { %519 = vtanh.f32 %v300_v38 }
 0x120   :  { %521 = vpow2.f32 %v450_v39 }
 0x129   :  { %v516_v40 = vpop.eup %515 }
 0x12a   :  { %v307_v41 = vadd.f32 1.0, %v516_v40 }
 0x12b   :  { %v518_v42 = vpop.eup %517 }
 0x12c   :  { %523 = vrcp.f32 %v307_v41  ;;  %v313_v43 = vadd.f32 1.0, %v518_v42  ;;  %v520_v44 = vpop.eup %519 }
 0x12d   :  { %v522_v45 = vpop.eup %521 }
 0x12e   :  { %525 = vrcp.f32 %v313_v43  ;;  %v320_v49 = vadd.f32 1.0, %v522_v45 }
 0x130   :  { %527 = vrcp.f32 %v320_v49 }
 0x139   :  { %v524_v46 = vpop.eup %523 }
 0x13a   :  { %v325_v51 = vmul.f32 %v524_v46, %v520_v44 }
 0x13b   :  { %v526_v48 = vpop.eup %525 }
 0x13c   :  { %v324_v50 = vmul.f32 %v526_v48, %v323_v47 }
 0x13d   :  { %v528_v53 = vpop.eup %527 }
 0x13e   :  { %v326_v52 = vadd.f32 %v325_v51, %v324_v50 }
 0x140   :  { %529 = vtanh.f32 %v326_v52  ;;  %416 = vst [vmem:[#allocation11] sm:$0xff] %v326_v52 }
 0x14d   :  { %v530_v54 = vpop.eup %529 }
 0x14e   :  { %v328_v55 = vmul.f32 %v530_v54, %v528_v53 }
 0x150   :  { %501 = vmatmul.mubr.f32.vlgmr.msra.gmra.mxu0 %v328_v55 }
 0x151   :  { %622 = shalt.err (!%p619_p10)
}
 0x152   :  { %436 = dma.vmem_to_hbm [thread:$0]  %s434_s19, 128, %s754_s6, [#allocation12]  }
 0x153   :  { %s672_s23 = smov [#allocation10]  }
 0x154   :  { %s423_s24 = sshll.u32 %s672_s23, 4  ;;  %s424_s24 = int_to_ptr.vmem [resolvable:$true] %s423_s24 }
 0x155   :  { %s631_s25 = scalar_lea.vmem %s424_s24, 128  ;;  %p636_p12 = scmp.lt.s32.totalorder %s424_s24, %s424_s24 }
 0x156   :  { %p632_p11 = scmp.ne.s32.totalorder %s424_s24, %s631_s25  ;;  %p637_p13 = scmp.lt.s32.totalorder %s631_s25, %s631_s25 }
 0x158   :  { %p638_p0 = por %p637_p13, %p636_p12 }
 0x15a   :  { %p639_p1 = pnand %p638_p0, %p632_p11 }
 0x210   :  { %v411_v56 = vpop.f32.mrf.mxu0 }
 0x211   :  { %415 = vst [vmem:[#allocation10] sm:$0xff] %v411_v56 }
 0x212   :  { %v502_v57 = vpop.f32.mrf.mxu0 }
 0x213   :  { %642 = shalt.err (!%p639_p1)
}
 0x214   :  { %426 = dma.vmem_to_hbm [thread:$0]  %s424_s24, 128, %s753_s5, [#allocation4]  }
 0x215   :  { %657 = dma.done.wait [#allocation4], 128  }
 0x216   :  { %658 = vsyncadd [#allocation4], 4294967168 }
 0x217   :  { %659 = dma.done.wait [#allocation12], 128  }
 0x218   :  { %660 = vsyncadd [#allocation12], 4294967168 }
 0x219   :  { %443 = vsyncpa [#allocation3], 1 }
 0x21a   :  { %444 = vsyncpa [#allocation6], 1 }
 0x21b   :  { %445 = vsyncpa [#allocation9], 1 }
 0x21c   :  { %446 = vsyncpa [#allocation4], 1 }
 0x21d   :  { %447 = vsyncpa [#allocation12], 1 }

</bundles_post_ra>
